<compile_context>
chip_gen: v5e
topology: v5e:2x2
jax: 0.10.0
libtpu: 0.0.40
codegen_flags: <defaults>
</compile_context>

<pallas_src>
import functools

import jax
import jax.numpy as jnp
from jax.experimental import pallas as pl
from jax.experimental.pallas import tpu as pltpu


def _round_up(n, m):
    return ((n + m - 1) // m) * m


def _fused_mlp_kernel(n_layers, *refs):
    """refs = (x_ref, W0, b0, W1, b1, ..., W_{L-1}, b_{L-1}, out_ref).

    One fused MLP: [Linear -> Tanh] x (L-1), then a final Linear whose
    block-diagonal structure makes its output columns exactly the
    concatenation of the four sub-nets' outputs.
    """
    x_ref = refs[0]
    out_ref = refs[-1]
    params = refs[1:-1]
    assert len(params) == 2 * n_layers

    h = x_ref[...].astype(jnp.float32)
    for i in range(n_layers):
        w = params[2 * i][...]        # (in, out)
        b = params[2 * i + 1][...]    # (1, out) -> broadcasts over the batch tile
        # Inside Pallas this uses the TPU default matmul precision; the fused
        # block-diagonal zeros contribute exactly 0, so accuracy matches the
        # unfused version (which met 1e-5 vs. a HIGHEST-precision reference).
        h = jnp.dot(h, w, preferred_element_type=jnp.float32) + b
        if i < n_layers - 1:          # final fused Linear has no Tanh
            h = jnp.tanh(h)
    out_ref[...] = h.astype(out_ref.dtype)


def _fuse_nets(nets, in_size):
    """Fuse k sub-MLPs into one block-diagonal MLP.

    Layer 0: every net reads the same x -> hstack weights along the out dim.
    Layers 1..L-1 (incl. final): block-diagonal -- each net's block occupies
    disjoint rows/cols, so the final layer's column order is exactly the
    concat order and no explicit concatenate / offsets are needed.
    (In production, precompute these fused params once, not per call.)
    """
    depths = {len(w) for (w, _) in nets}
    assert len(depths) == 1, "all sub-nets must have the same number of Linear layers"
    n_layers = depths.pop()
    for w, _ in nets:
        assert w[0].shape[0] == in_size, "all sub-nets must share the input width"

    fused = []
    for j in range(n_layers):
        ws = [w[j].astype(jnp.float32) for (w, _) in nets]
        bs = [b[j].reshape(1, -1).astype(jnp.float32) for (_, b) in nets]
        if j == 0:
            wf = jnp.concatenate(ws, axis=1)                 # (in, sum_out)
        else:
            rows = sum(w.shape[0] for w in ws)
            cols = sum(w.shape[1] for w in ws)
            wf = jnp.zeros((rows, cols), jnp.float32)
            r = c = 0
            for w in ws:                                     # disjoint blocks -> concat by construction
                wf = wf.at[r:r + w.shape[0], c:c + w.shape[1]].set(w)
                r += w.shape[0]
                c += w.shape[1]
            assert r == rows and c == cols                   # guards the disjointness invariant
        bf = jnp.concatenate(bs, axis=1)
        fused += [wf, bf]
    return n_layers, fused


def concat_net_forward(x, nets, *, batch_tile=4096):
    """ConcatNet forward: out = concat([net_i(x) for net_i in nets], axis=1).

    x: (B, input_size) float32.
    nets: list of (weights, biases); weights[j]: (in_j, out_j) (pre-transposed
          vs PyTorch nn.Linear), biases[j]: (out_j,).
    """
    B, in_size = x.shape
    n_layers, fused_params = _fuse_nets(nets, in_size)
    total_out = fused_params[-1].shape[1]   # final fused bias width == concat width

    # Batch tiling: multiple of 8 (sublane constraint).  Cap the tile at
    # ceil(B/2) so the grid always has >=2 steps -- otherwise v7x's second
    # TensorCore sits idle under dimension_semantics=("parallel",).
    half = _round_up(max(-(-B // 2), 8), 8)
    tb = _round_up(min(batch_tile, half), 8)
    b_pad = _round_up(B, tb)
    if b_pad != B:
        x = jnp.pad(x, ((0, b_pad - B), (0, 0)))
    grid = (b_pad // tb,)

    x_spec = pl.BlockSpec((tb, in_size), lambda i: (i, 0))
    # Constant index_map: fused weights/biases are full-array blocks that stay
    # VMEM-resident across batch tiles.
    param_specs = [pl.BlockSpec(p.shape, lambda i: (0, 0)) for p in fused_params]
    # Unpadded output: block last dim equals the full array dim (legal), so no
    # padded writeback and no wrapper column slice.
    out_spec = pl.BlockSpec((tb, total_out), lambda i: (i, 0))

    kernel = functools.partial(_fused_mlp_kernel, n_layers)

    out = pl.pallas_call(
        kernel,
        grid=grid,
        in_specs=[x_spec] + param_specs,
        out_specs=out_spec,
        out_shape=jax.ShapeDtypeStruct((b_pad, total_out), jnp.float32),
        compiler_params=pltpu.CompilerParams(
            # Batch tiles are independent -> shard across v7x's 2 TensorCores.
            dimension_semantics=("parallel",),
            # Tiny footprint even at tb=4096 (x/out tiles + 128-wide hidden
            # intermediates); stays within every generation's scoped VMEM.
            vmem_limit_bytes=32 * 1024 * 1024,
        ),
    )(x, *fused_params)

    if b_pad != B:
        out = out[:B]   # padded batch rows hold tanh(bias) garbage; drop them
    return out


def init_mlp_params(key, input_size, hidden_size, output_size, hidden_num):
    """Per-sub-net init mirroring DNN3: Linear(in,h), [Linear(h,h)]*(n-1), Linear(h,out)."""
    dims = [input_size] + [hidden_size] * hidden_num + [output_size]
    weights, biases = [], []
    for i in range(len(dims) - 1):
        fan_in, fan_out = dims[i], dims[i + 1]
        key, kw, kb = jax.random.split(key, 3)
        bound = 1.0 / jnp.sqrt(fan_in)  # PyTorch nn.Linear default uniform bound
        weights.append(jax.random.uniform(kw, (fan_in, fan_out), jnp.float32,
                                          -bound, bound))
        biases.append(jax.random.uniform(kb, (fan_out,), jnp.float32,
                                         -bound, bound))
    return weights, biases


def _mlp_reference(x, weights, biases):
    h = x
    n = len(weights)
    for i, (w, b) in enumerate(zip(weights, biases)):
        h = jnp.dot(h, w, precision=jax.lax.Precision.HIGHEST) + b
        if i < n - 1:
            h = jnp.tanh(h)
    return h


def concat_net_reference(x, nets):
    return jnp.concatenate([_mlp_reference(x, w, b) for (w, b) in nets], axis=1)


if __name__ == "__main__":
    # Small shapes consistent with the Hyperelastic setup: 4 sub-MLPs, each
    # 4 -> 32 -> 32 -> 32 -> 3, outputs concatenated to width 12.
    input_size, hidden_size, output_size, hidden_num = 4, 32, 3, 3
    batch = 64

    key = jax.random.PRNGKey(0)
    key, kx = jax.random.split(key)
    x = jax.random.normal(kx, (batch, input_size), jnp.float32)

    nets = []
    for _ in range(4):
        key, knet = jax.random.split(key)
        nets.append(init_mlp_params(knet, input_size, hidden_size,
                                    output_size, hidden_num))

    # Default batch_tile=4096 is capped to ceil(B/2)=32 here -> grid of 2
    # batch tiles (exercises pipelining + the parallel axis at this toy size).
    out = concat_net_forward(x, nets)
    out = jax.block_until_ready(out)

    ref = concat_net_reference(x, nets)
    assert out.shape == (batch, 4 * output_size)
    assert jnp.allclose(out, ref, atol=1e-5, rtol=1e-5), "mismatch vs JAX reference"

    print("KERNEL_OK")
</pallas_src>

<mosaic_0001>
module attributes {stable_mosaic.version = 11 : i64} {
  func.func @_fused_mlp_kernel(%arg0: i32, %arg1: memref<32x4xf32, #tpu.memory_space<vmem>>, %arg2: memref<4x128xf32, #tpu.memory_space<vmem>>, %arg3: memref<1x128xf32, #tpu.memory_space<vmem>>, %arg4: memref<128x128xf32, #tpu.memory_space<vmem>>, %arg5: memref<1x128xf32, #tpu.memory_space<vmem>>, %arg6: memref<128x128xf32, #tpu.memory_space<vmem>>, %arg7: memref<1x128xf32, #tpu.memory_space<vmem>>, %arg8: memref<128x12xf32, #tpu.memory_space<vmem>>, %arg9: memref<1x12xf32, #tpu.memory_space<vmem>>, %arg10: memref<32x12xf32, #tpu.memory_space<vmem>>) attributes {dimension_semantics = [#tpu.dimension_semantics<parallel>], iteration_bounds = array<i64: 2>, scalar_prefetch = 0 : i64, scratch_operands = 0 : i64, tpu.core_type = #tpu.core_type<tc>, window_params = [{transform_indices = @transform_0, window_bounds = array<i64: 32, 4>}, {pipeline_mode = #tpu.pipeline_mode<synchronous>, transform_indices = @transform_1, window_bounds = array<i64: 4, 128>}, {pipeline_mode = #tpu.pipeline_mode<synchronous>, transform_indices = @transform_2, window_bounds = array<i64: 1, 128>}, {pipeline_mode = #tpu.pipeline_mode<synchronous>, transform_indices = @transform_3, window_bounds = array<i64: 128, 128>}, {pipeline_mode = #tpu.pipeline_mode<synchronous>, transform_indices = @transform_4, window_bounds = array<i64: 1, 128>}, {pipeline_mode = #tpu.pipeline_mode<synchronous>, transform_indices = @transform_5, window_bounds = array<i64: 128, 128>}, {pipeline_mode = #tpu.pipeline_mode<synchronous>, transform_indices = @transform_6, window_bounds = array<i64: 1, 128>}, {pipeline_mode = #tpu.pipeline_mode<synchronous>, transform_indices = @transform_7, window_bounds = array<i64: 128, 12>}, {pipeline_mode = #tpu.pipeline_mode<synchronous>, transform_indices = @transform_8, window_bounds = array<i64: 1, 12>}, {transform_indices = @transform_9, window_bounds = array<i64: 32, 12>}]} {
    %c0 = arith.constant 0 : index
    %c0_0 = arith.constant 0 : index
    %0 = vector.load %arg1[%c0, %c0_0] : memref<32x4xf32, #tpu.memory_space<vmem>>, vector<32x4xf32>
    %c0_1 = arith.constant 0 : index
    %c0_2 = arith.constant 0 : index
    %1 = vector.load %arg2[%c0_1, %c0_2] : memref<4x128xf32, #tpu.memory_space<vmem>>, vector<4x128xf32>
    %c0_3 = arith.constant 0 : index
    %c0_4 = arith.constant 0 : index
    %2 = vector.load %arg3[%c0_3, %c0_4] : memref<1x128xf32, #tpu.memory_space<vmem>>, vector<1x128xf32>
    %cst = arith.constant dense<0.000000e+00> : vector<32x128xf32>
    %3 = tpu.matmul %0, %1, %cst {dimension_numbers = #tpu.dot_dimension_numbers<[1], [0], [0], [1], [0, 0, 1, 1], [], []>} : vector<32x4xf32>, vector<4x128xf32>, vector<32x128xf32> -> vector<32x128xf32>
    %4 = vector.broadcast %2 : vector<1x128xf32> to vector<32x128xf32>
    %5 = arith.addf %3, %4 : vector<32x128xf32>
    %6 = math.tanh %5 : vector<32x128xf32>
    %c0_5 = arith.constant 0 : index
    %c0_6 = arith.constant 0 : index
    %7 = vector.load %arg4[%c0_5, %c0_6] : memref<128x128xf32, #tpu.memory_space<vmem>>, vector<128x128xf32>
    %c0_7 = arith.constant 0 : index
    %c0_8 = arith.constant 0 : index
    %8 = vector.load %arg5[%c0_7, %c0_8] : memref<1x128xf32, #tpu.memory_space<vmem>>, vector<1x128xf32>
    %cst_9 = arith.constant dense<0.000000e+00> : vector<32x128xf32>
    %9 = tpu.matmul %6, %7, %cst_9 {dimension_numbers = #tpu.dot_dimension_numbers<[1], [0], [0], [1], [0, 0, 1, 1], [], []>} : vector<32x128xf32>, vector<128x128xf32>, vector<32x128xf32> -> vector<32x128xf32>
    %10 = vector.broadcast %8 : vector<1x128xf32> to vector<32x128xf32>
    %11 = arith.addf %9, %10 : vector<32x128xf32>
    %12 = math.tanh %11 : vector<32x128xf32>
    %c0_10 = arith.constant 0 : index
    %c0_11 = arith.constant 0 : index
    %13 = vector.load %arg6[%c0_10, %c0_11] : memref<128x128xf32, #tpu.memory_space<vmem>>, vector<128x128xf32>
    %c0_12 = arith.constant 0 : index
    %c0_13 = arith.constant 0 : index
    %14 = vector.load %arg7[%c0_12, %c0_13] : memref<1x128xf32, #tpu.memory_space<vmem>>, vector<1x128xf32>
    %cst_14 = arith.constant dense<0.000000e+00> : vector<32x128xf32>
    %15 = tpu.matmul %12, %13, %cst_14 {dimension_numbers = #tpu.dot_dimension_numbers<[1], [0], [0], [1], [0, 0, 1, 1], [], []>} : vector<32x128xf32>, vector<128x128xf32>, vector<32x128xf32> -> vector<32x128xf32>
    %16 = vector.broadcast %14 : vector<1x128xf32> to vector<32x128xf32>
    %17 = arith.addf %15, %16 : vector<32x128xf32>
    %18 = math.tanh %17 : vector<32x128xf32>
    %c0_15 = arith.constant 0 : index
    %c0_16 = arith.constant 0 : index
    %19 = vector.load %arg8[%c0_15, %c0_16] : memref<128x12xf32, #tpu.memory_space<vmem>>, vector<128x12xf32>
    %c0_17 = arith.constant 0 : index
    %c0_18 = arith.constant 0 : index
    %20 = vector.load %arg9[%c0_17, %c0_18] : memref<1x12xf32, #tpu.memory_space<vmem>>, vector<1x12xf32>
    %cst_19 = arith.constant dense<0.000000e+00> : vector<32x12xf32>
    %21 = tpu.matmul %18, %19, %cst_19 {dimension_numbers = #tpu.dot_dimension_numbers<[1], [0], [0], [1], [0, 0, 1, 1], [], []>} : vector<32x128xf32>, vector<128x12xf32>, vector<32x12xf32> -> vector<32x12xf32>
    %22 = vector.broadcast %20 : vector<1x12xf32> to vector<32x12xf32>
    %23 = arith.addf %21, %22 : vector<32x12xf32>
    %c0_20 = arith.constant 0 : index
    %c0_21 = arith.constant 0 : index
    %24 = vector.load %arg10[%c0_20, %c0_21] : memref<32x12xf32, #tpu.memory_space<vmem>>, vector<32x12xf32>
    tpu.vector_store %arg10[%c0_20, %c0_21], %23 {strides = array<i32>} : memref<32x12xf32, #tpu.memory_space<vmem>>, vector<32x12xf32>,
    return
  }
  func.func @transform_0(%arg0: i32) -> (i32, i32) {
    %c0_i32 = arith.constant 0 : i32
    %c0_i32_0 = arith.constant 0 : i32
    return %arg0, %c0_i32 : i32, i32
  }
  func.func @transform_1(%arg0: i32) -> (i32, i32) {
    %c0_i32 = arith.constant 0 : i32
    %c0_i32_0 = arith.constant 0 : i32
    %c0_i32_1 = arith.constant 0 : i32
    return %c0_i32, %c0_i32_0 : i32, i32
  }
  func.func @transform_2(%arg0: i32) -> (i32, i32) {
    %c0_i32 = arith.constant 0 : i32
    %c0_i32_0 = arith.constant 0 : i32
    %c0_i32_1 = arith.constant 0 : i32
    return %c0_i32, %c0_i32_0 : i32, i32
  }
  func.func @transform_3(%arg0: i32) -> (i32, i32) {
    %c0_i32 = arith.constant 0 : i32
    %c0_i32_0 = arith.constant 0 : i32
    %c0_i32_1 = arith.constant 0 : i32
    return %c0_i32, %c0_i32_0 : i32, i32
  }
  func.func @transform_4(%arg0: i32) -> (i32, i32) {
    %c0_i32 = arith.constant 0 : i32
    %c0_i32_0 = arith.constant 0 : i32
    %c0_i32_1 = arith.constant 0 : i32
    return %c0_i32, %c0_i32_0 : i32, i32
  }
  func.func @transform_5(%arg0: i32) -> (i32, i32) {
    %c0_i32 = arith.constant 0 : i32
    %c0_i32_0 = arith.constant 0 : i32
    %c0_i32_1 = arith.constant 0 : i32
    return %c0_i32, %c0_i32_0 : i32, i32
  }
  func.func @transform_6(%arg0: i32) -> (i32, i32) {
    %c0_i32 = arith.constant 0 : i32
    %c0_i32_0 = arith.constant 0 : i32
    %c0_i32_1 = arith.constant 0 : i32
    return %c0_i32, %c0_i32_0 : i32, i32
  }
  func.func @transform_7(%arg0: i32) -> (i32, i32) {
    %c0_i32 = arith.constant 0 : i32
    %c0_i32_0 = arith.constant 0 : i32
    %c0_i32_1 = arith.constant 0 : i32
    return %c0_i32, %c0_i32_0 : i32, i32
  }
  func.func @transform_8(%arg0: i32) -> (i32, i32) {
    %c0_i32 = arith.constant 0 : i32
    %c0_i32_0 = arith.constant 0 : i32
    %c0_i32_1 = arith.constant 0 : i32
    return %c0_i32, %c0_i32_0 : i32, i32
  }
  func.func @transform_9(%arg0: i32) -> (i32, i32) {
    %c0_i32 = arith.constant 0 : i32
    %c0_i32_0 = arith.constant 0 : i32
    return %arg0, %c0_i32 : i32, i32
  }
}

</mosaic_0001>

<bundles_post_ra>
// kernel: tpu_custom_call.1
= control target key start
LH: loop header
LB: loop body
LE: loop exit
PB: predicated region body
PF: predicated region fallthrough
CT: control target
= control target key end

     0   :  { %14 = vsyncpa [#allocation3], 0  ;;  %s818_s30 = smov 0   ;;  %s966_s0 = inlined_call_operand.vmem [shape: f32[64,4], index: 0, kind: input, shape index: {}]   ;;  %s967_s1 = inlined_call_operand.vmem [shape: f32[4,128], index: 1, kind: input, shape index: {}]   ;;  %s968_s2 = inlined_call_operand.vmem [shape: f32[1,128], index: 2, kind: input, shape index: {}]   ;;  %s969_s3 = inlined_call_operand.vmem [shape: f32[128,128], index: 3, kind: input, shape index: {}]   ;;  %s970_s4 = inlined_call_operand.vmem [shape: f32[1,128], index: 4, kind: input, shape index: {}]   ;;  %s971_s5 = inlined_call_operand.hbm [shape: f32[128,128], index: 5, kind: input, shape index: {}]   ;;  %s972_s6 = inlined_call_operand.vmem [shape: f32[1,128], index: 6, kind: input, shape index: {}]   ;;  %s973_s7 = inlined_call_operand.vmem [shape: f32[128,12], index: 7, kind: input, shape index: {}]   ;;  %s974_s8 = inlined_call_operand.vmem [shape: f32[1,12], index: 8, kind: input, shape index: {}]   ;;  %s975_s9 = inlined_call_operand.vmem [shape: f32[64,12], index: 9, kind: output, shape index: {}]  }
   0x1 LB: > { %s268_s12 = sshll.u32 %s971_s5, 4  ;;  %s640_s13 = sadd.s32 4294967295, %s763_s30   ;;  %s763_s30 = sphi %s818_s30, %s20_s30   ;;  %s269_s12 = int_to_ptr.hbm [resolvable:$true] %s268_s12 }
   0x2   : > { %p642_p0 = scmp.ge.s32.totalorder %s763_s30, 1  ;;  %p245_p1 = scmp.lt.s32.totalorder %s763_s30, 3 }
   0x3   : > { %p682_p2 = scmp.eq.s32.totalorder %s640_s13, 0  ;;  %s765_s14 = smov [#allocation2]  }
   0x4   : > { %p246_p3 = pnand %p642_p0, %p245_p1  ;;  %s270_s15 = sshll.u32 %s765_s14, 4  ;;  %s271_s15 = int_to_ptr.vmem [resolvable:$true] %s270_s15 }
   0x5   : > { %s766_s16 = smov 128   ;;  %s767_s17 = smov 8  }
   0x6   : > { %p678_p4 = pneg %p246_p3  ;;  %304 = sbr.rel (%p246_p3) target bundleno = 589 (0x24d), region = 56 }
   0x8   : > { %p679_p5 = pnand %p682_p2, %p678_p4 }
   0xa   : > { %681 = dma.hbm_to_vmem [thread:$0]  (!%p679_p5), %s269_s12, 2048, %s271_s15, [#allocation3], %s766_s16, %s766_s16, %s767_s17  }
   0xb   : > { %758 = dma.done.wait (%p682_p2), [#allocation3], 2048  }
   0xc   : > { %760 = vsyncadd (%p682_p2), [#allocation3], 4294965248  ;;  %s647_s18 = sshll.u32 %s640_s13, 2  ;;  %vm375_vm0 = vcmask 1043456   ;;  %vm362_vm1 = vcmask 31744   ;;  %v427_v2 = vld [vmem:[%s969_s3 + $0x78] sm:$0xff] }
   0xd   : > { %p342_p6 = scmp.lt.s32.totalorder %s647_s18, 7  ;;  %v357_v0 = vld [vmem:[%s967_s1] sm:$0xf]  ;;  %v426_v3 = vld [vmem:[%s969_s3 + $0x70] sm:$0xff]  ;;  %658 = vmatpush.msra.mxu1 %v427_v2  ;;  %v425_v4 = vld [vmem:[%s969_s3 + $0x68] sm:$0xff]  ;;  %vm567_vm2 = vcmask 97280  }
   0xe   : > { %651 = vmatpush.msk.msra.mxu0 %vm375_vm0, %v357_v0  ;;  %v424_v5 = vld [vmem:[%s969_s3 + $0x60] sm:$0xff]  ;;  %v423_v7 = vld [vmem:[%s969_s3 + $0x58] sm:$0xff]  ;;  %v422_v8 = vld [vmem:[%s969_s3 + $0x50] sm:$0xff] }
   0xf   : > { %s977_s18 = smov (!%p342_p6, %s647_s18), 7  ;;  %659 = vmatpush.msra.mxu1 %v426_v3  ;;  %v421_v9 = vld [vmem:[%s969_s3 + $0x48] sm:$0xff]  ;;  %v420_v10 = vld [vmem:[%s969_s3 + $0x40] sm:$0xff]  ;;  %v419_v12 = vld [vmem:[%s969_s3 + $0x38] sm:$0xff] }
  0x10   : > { %s648_s19 = sshll.u32 %s977_s18, 3  ;;  %432 = vmatpush.msrb.mxu0 %v427_v2  ;;  %v418_v13 = vld [vmem:[%s969_s3 + $0x30] sm:$0xff]  ;;  %v417_v14 = vld [vmem:[%s969_s3 + $0x28] sm:$0xff]  ;;  %v416_v16 = vld [vmem:[%s969_s3 + $0x20] sm:$0xff] }
  0x11   : > { %s837_s22 = scalar_lea.vmem %s966_s0, %s648_s19  ;;  %660 = vmatpush.msra.mxu1 %v425_v4  ;;  %v415_v17 = vld [vmem:[%s969_s3 + $0x18] sm:$0xff]  ;;  %v414_v18 = vld [vmem:[%s969_s3 + $0x10] sm:$0xff]  ;;  %v413_v19 = vld [vmem:[%s969_s3 + $0x8] sm:$0xff]  ;;  %s351_s28 = scalar_lea.vmem %s975_s9, %s648_s19 }
  0x12   : > { %v353_v1 = vld [vmem:[%s837_s22] sm:$0xff]  ;;  %433 = vmatpush.msrb.mxu0 %v426_v3  ;;  %v354_v6 = vld [vmem:[%s837_s22 + $0x8] sm:$0xff]  ;;  %v355_v11 = vld [vmem:[%s837_s22 + $0x10] sm:$0xff] }
  0x13   : > { %652 = vmatmul.msk.f32.vlgmr.msra.gmra.mxu0 %vm362_vm1, %v353_v1  ;;  %661 = vmatpush.msra.mxu1 %v424_v5  ;;  %v356_v15 = vld [vmem:[%s837_s22 + $0x18] sm:$0xff]  ;;  %v412_v20 = vld [vmem:[%s969_s3] sm:$0xff]  ;;  %v479_v25 = vld [vmem:[#allocation2 + $0x70] sm:$0xff] }
  0x14   : > { %434 = vmatpush.msrb.mxu0 %v425_v4  ;;  %v695_v21 = vld [vmem:[%s968_s2] ss:$0 sm:$0xff]  ;;  %v480_v24 = vld [vmem:[#allocation2 + $0x78] sm:$0xff]  ;;  %v478_v26 = vld [vmem:[#allocation2 + $0x68] sm:$0xff] }
  0x15   : > { %662 = vmatpush.msra.mxu1 %v423_v7  ;;  %485 = vmatpush.msra.mxu2 %v480_v24  ;;  %v477_v27 = vld [vmem:[#allocation2 + $0x60] sm:$0xff]  ;;  %v476_v29 = vld [vmem:[#allocation2 + $0x58] sm:$0xff]  ;;  %v475_v32 = vld [vmem:[#allocation2 + $0x50] sm:$0xff] }
  0x16   : > { %435 = vmatpush.msrb.mxu0 %v424_v5  ;;  %v474_v33 = vld [vmem:[#allocation2 + $0x48] sm:$0xff]  ;;  %v473_v34 = vld [vmem:[#allocation2 + $0x40] sm:$0xff]  ;;  %v472_v36 = vld [vmem:[#allocation2 + $0x38] sm:$0xff] }
  0x17   : > { %663 = vmatpush.msra.mxu1 %v422_v8  ;;  %486 = vmatpush.msra.mxu2 %v479_v25  ;;  %v471_v39 = vld [vmem:[#allocation2 + $0x30] sm:$0xff]  ;;  %v470_v40 = vld [vmem:[#allocation2 + $0x28] sm:$0xff]  ;;  %v469_v45 = vld [vmem:[#allocation2 + $0x20] sm:$0xff] }
  0x18   : > { %436 = vmatpush.msrb.mxu0 %v423_v7  ;;  %v468_v46 = vld [vmem:[#allocation2 + $0x18] sm:$0xff]  ;;  %v467_v47 = vld [vmem:[#allocation2 + $0x10] sm:$0xff]  ;;  %v466_v48 = vld [vmem:[#allocation2 + $0x8] sm:$0xff] }
  0x19   : > { %664 = vmatpush.msra.mxu1 %v421_v9  ;;  %487 = vmatpush.msra.mxu2 %v478_v26  ;;  %v465_v49 = vld [vmem:[#allocation2] sm:$0xff]  ;;  %v533_v53 = vld [vmem:[%s973_s7 + $0x78] sm:$0xff]  ;;  %v532_v54 = vld [vmem:[%s973_s7 + $0x70] sm:$0xff] }
  0x1a   : > { %437 = vmatpush.msrb.mxu0 %v422_v8  ;;  %v696_v50 = vld [vmem:[%s970_s4] ss:$0 sm:$0xff]  ;;  %538 = vmatpush.msra.mxu3 %v533_v53  ;;  %v531_v55 = vld [vmem:[%s973_s7 + $0x68] sm:$0xff]  ;;  %v529_v58 = vld [vmem:[%s973_s7 + $0x58] sm:$0xff] }
  0x1b   : > { %653 = vmatmul.msk.f32.gmra.mxu0 %vm362_vm1, %v354_v6  ;;  %665 = vmatpush.msra.mxu1 %v420_v10  ;;  %v530_v56 = vld [vmem:[%s973_s7 + $0x60] sm:$0xff]  ;;  %v528_v61 = vld [vmem:[%s973_s7 + $0x50] sm:$0xff]  ;;  %v527_v62 = vld [vmem:[%s973_s7 + $0x48] sm:$0xff] }
  0x1c   : > { %438 = vmatpush.msrb.mxu0 %v421_v9  ;;  %488 = vmatpush.msra.mxu2 %v477_v27  ;;  %v526_v63 = vld [vmem:[%s973_s7 + $0x40] sm:$0xff]  ;;  %v525_v1 = vld [vmem:[%s973_s7 + $0x38] sm:$0xff]  ;;  %v524_v4 = vld [vmem:[%s973_s7 + $0x30] sm:$0xff] }
  0x1d   : > { %666 = vmatpush.msra.mxu1 %v419_v12  ;;  %539 = vmatpush.msra.mxu3 %v532_v54  ;;  %v523_v5 = vld [vmem:[%s973_s7 + $0x28] sm:$0xff] }
  0x1e   : > { %439 = vmatpush.msrb.mxu0 %v420_v10  ;;  %489 = vmatpush.msra.mxu2 %v476_v29  ;;  %v522_v10 = vld [vmem:[%s973_s7 + $0x20] sm:$0xff] }
  0x1f   : > { %667 = vmatpush.msra.mxu1 %v418_v13  ;;  %540 = vmatpush.msra.mxu3 %v531_v55 }
  0x20   : > { %440 = vmatpush.msrb.mxu0 %v419_v12  ;;  %490 = vmatpush.msra.mxu2 %v475_v32  ;;  %v520_v12 = vld [vmem:[%s973_s7 + $0x10] sm:$0xff] }
  0x21   : > { %668 = vmatpush.msra.mxu1 %v417_v14  ;;  %541 = vmatpush.msra.mxu3 %v530_v56 }
  0x22   : > { %441 = vmatpush.msrb.mxu0 %v418_v13  ;;  %491 = vmatpush.msra.mxu2 %v474_v33  ;;  %v519_v13 = vld [vmem:[%s973_s7 + $0x8] sm:$0xff] }
  0x23   : > { %654 = vmatmul.msk.f32.gmra.mxu0 %vm362_vm1, %v355_v11  ;;  %669 = vmatpush.msra.mxu1 %v416_v16  ;;  %v521_v11 = vld [vmem:[%s973_s7 + $0x18] sm:$0xff] }
  0x24   : > { %442 = vmatpush.msrb.mxu0 %v417_v14  ;;  %492 = vmatpush.msra.mxu2 %v473_v34  ;;  %v518_v14 = vld [vmem:[%s973_s7] sm:$0xff] }
  0x25   : > { %670 = vmatpush.msra.mxu1 %v415_v17  ;;  %542 = vmatpush.msra.mxu3 %v529_v58 }
  0x26   : > { %443 = vmatpush.msrb.mxu0 %v416_v16  ;;  %493 = vmatpush.msra.mxu2 %v472_v36 }
  0x27   : > { %671 = vmatpush.msra.mxu1 %v414_v18  ;;  %543 = vmatpush.msra.mxu3 %v528_v61 }
  0x28   : > { %444 = vmatpush.msrb.mxu0 %v415_v17  ;;  %494 = vmatpush.msra.mxu2 %v471_v39 }
  0x29   : > { %672 = vmatpush.msra.mxu1 %v413_v19  ;;  %544 = vmatpush.msra.mxu3 %v527_v62 }
  0x2a   : > { %445 = vmatpush.msrb.mxu0 %v414_v18  ;;  %495 = vmatpush.msra.mxu2 %v470_v40 }
  0x2b   : > { %655 = vmatmul.msk.f32.gmra.mxu0 %vm362_vm1, %v356_v15  ;;  %673 = vmatpush.msra.mxu1 %v412_v20  ;;  %v697_v15 = vld [vmem:[%s972_s6] ss:$0 sm:$0xff] }
  0x2c   : > { %446 = vmatpush.msrb.mxu0 %v413_v19  ;;  %496 = vmatpush.msra.mxu2 %v469_v45 }
  0x2d   : > { %545 = vmatpush.msra.mxu3 %v526_v63 }
  0x2e   : > { %447 = vmatpush.msrb.mxu0 %v412_v20  ;;  %497 = vmatpush.msra.mxu2 %v468_v46 }
  0x2f   : > { %546 = vmatpush.msra.mxu3 %v525_v1 }
  0x30   : > { %498 = vmatpush.msra.mxu2 %v467_v47 }
  0x31   : > { %547 = vmatpush.msra.mxu3 %v524_v4 }
  0x32   : > { %499 = vmatpush.msra.mxu2 %v466_v48 }
  0x33   : > { %548 = vmatpush.msra.mxu3 %v523_v5 }
  0x34   : > { %500 = vmatpush.msra.mxu2 %v465_v49 }
  0x35   : > { %549 = vmatpush.msra.mxu3 %v522_v10 }
  0x37   : > { %550 = vmatpush.msra.mxu3 %v521_v11 }
  0x39   : > { %551 = vmatpush.msra.mxu3 %v520_v12 }
  0x3b   : > { %552 = vmatpush.msra.mxu3 %v519_v13 }
  0x3d   : > { %553 = vmatpush.msra.mxu3 %v518_v14 }
  0x90   : > { %v396_v22 = vpop.f32.mrf.mxu0 }
  0x91   : > { %v397_v23 = vadd.f32 %v695_v21, %v396_v22 }
  0x93   : > { %699 = vtanh.f32 %v397_v23 }
  0x98   : > { %v399_v28 = vpop.f32.mrf.mxu0 }
  0x99   : > { %v700_v30 = vpop.eup %699  ;;  %v400_v31 = vadd.f32 %v695_v21, %v399_v28  ;;  %v698_v28 = vld [vmem:[%s974_s8] ss:$0 sm:$0xff] }
  0x9a   : > { %448 = vmatmul.f32.vlgmr.msrb.gmra.mxu0 %v700_v30 }
  0x9b   : > { %701 = vtanh.f32 %v400_v31 }
  0xa0   : > { %v402_v35 = vpop.f32.mrf.mxu0 }
  0xa1   : > { %v702_v37 = vpop.eup %701  ;;  %v403_v38 = vadd.f32 %v695_v21, %v402_v35 }
  0xa2   : > { %451 = vmatmul.f32.vlgmr.msra.gmra.mxu1 %v702_v37 }
  0xa3   : > { %703 = vtanh.f32 %v403_v38 }
  0xa8   : > { %v405_v41 = vpop.f32.mrf.mxu0 }
  0xa9   : > { %v704_v42 = vpop.eup %703  ;;  %v406_v43 = vadd.f32 %v695_v21, %v405_v41 }
  0xaa   : > { %454 = vmatmul.f32.gmra.mxu1 %v704_v42 }
  0xab   : > { %705 = vtanh.f32 %v406_v43 }
  0xb1   : > { %v706_v44 = vpop.eup %705 }
  0xb2   : > { %457 = vmatmul.f32.gmra.mxu1 %v706_v44 }
 0x117   : > { %v449_v51 = vpop.f32.mrf.mxu0 }
 0x118   : > { %v450_v52 = vadd.f32 %v696_v50, %v449_v51 }
 0x11a   : > { %707 = vtanh.f32 %v450_v52 }
 0x11f   : > { %v452_v57 = vpop.f32.mrf.mxu1 }
 0x120   : > { %v708_v59 = vpop.eup %707  ;;  %v453_v60 = vadd.f32 %v696_v50, %v452_v57 }
 0x121   : > { %501 = vmatmul.f32.vlgmr.msra.gmra.mxu2 %v708_v59 }
 0x122   : > { %709 = vtanh.f32 %v453_v60 }
 0x127   : > { %v455_v0 = vpop.f32.mrf.mxu1 }
 0x128   : > { %v710_v2 = vpop.eup %709  ;;  %v456_v3 = vadd.f32 %v696_v50, %v455_v0 }
 0x129   : > { %504 = vmatmul.f32.gmra.mxu2 %v710_v2 }
 0x12a   : > { %711 = vtanh.f32 %v456_v3 }
 0x12f   : > { %v458_v6 = vpop.f32.mrf.mxu1 }
 0x130   : > { %v712_v7 = vpop.eup %711  ;;  %v459_v8 = vadd.f32 %v696_v50, %v458_v6 }
 0x131   : > { %507 = vmatmul.f32.gmra.mxu2 %v712_v7 }
 0x132   : > { %713 = vtanh.f32 %v459_v8 }
 0x138   : > { %v714_v9 = vpop.eup %713 }
 0x139   : > { %510 = vmatmul.f32.gmra.mxu2 %v714_v9 }
 0x1a4   : > { %v502_v16 = vpop.f32.mrf.mxu2 }
 0x1a5   : > { %v503_v17 = vadd.f32 %v697_v15, %v502_v16 }
 0x1a7   : > { %715 = vtanh.f32 %v503_v17 }
 0x1ac   : > { %v505_v18 = vpop.f32.mrf.mxu2 }
 0x1ad   : > { %v716_v19 = vpop.eup %715  ;;  %v506_v20 = vadd.f32 %v697_v15, %v505_v18 }
 0x1ae   : > { %554 = vmatmul.f32.vlgmr.msra.gmra.mxu3 %v716_v19 }
 0x1af   : > { %717 = vtanh.f32 %v506_v20 }
 0x1b4   : > { %v508_v21 = vpop.f32.mrf.mxu2 }
 0x1b5   : > { %v718_v22 = vpop.eup %717  ;;  %v509_v23 = vadd.f32 %v697_v15, %v508_v21 }
 0x1b6   : > { %557 = vmatmul.f32.gmra.mxu3 %v718_v22 }
 0x1b7   : > { %719 = vtanh.f32 %v509_v23 }
 0x1bc   : > { %v511_v24 = vpop.f32.mrf.mxu2 }
 0x1bd   : > { %v720_v25 = vpop.eup %719  ;;  %v512_v26 = vadd.f32 %v697_v15, %v511_v24 }
 0x1be   : > { %560 = vmatmul.f32.gmra.mxu3 %v720_v25 }
 0x1bf   : > { %721 = vtanh.f32 %v512_v26 }
 0x1c5   : > { %v722_v27 = vpop.eup %721 }
 0x1c6   : > { %563 = vmatmul.f32.gmra.mxu3 %v722_v27 }
 0x231   : > { %v555_v29 = vpop.f32.mrf.mxu3 }
 0x232   : > { %v556_v30 = vadd.f32 %v698_v28, %v555_v29 }
 0x234   : > { %568 = vst.msk [vmem:[%s351_s28] sm:$0xff] %vm567_vm2, %v556_v30 }
 0x239   : > { %v558_v31 = vpop.f32.mrf.mxu3 }
 0x23a   : > { %v559_v32 = vadd.f32 %v698_v28, %v558_v31 }
 0x23c   : > { %569 = vst.msk [vmem:[%s351_s28 + $0x8] sm:$0xff] %vm567_vm2, %v559_v32 }
 0x241   : > { %v561_v33 = vpop.f32.mrf.mxu3 }
 0x242   : > { %v562_v34 = vadd.f32 %v698_v28, %v561_v33 }
 0x244   : > { %570 = vst.msk [vmem:[%s351_s28 + $0x10] sm:$0xff] %vm567_vm2, %v562_v34 }
 0x249   : > { %v564_v35 = vpop.f32.mrf.mxu3 }
 0x24a   : > { %v565_v36 = vadd.f32 %v698_v28, %v564_v35 }
 0x24c   : > { %571 = vst.msk [vmem:[%s351_s28 + $0x18] sm:$0xff] %vm567_vm2, %v565_v36 }
 0x24d PF: > { %s20_s30 = sadd.s32 1, %s763_s30  }
 0x24e   : > { %p17_p7 = scmp.ge.s32.totalorder %s20_s30, 4  }
 0x250   :  { %19 = sbr.rel (!%p17_p7) target bundleno = 1 (0x1), region = 91 }
 0x255   :  { %594 = vsyncpa [#allocation3], 1 }
 0x256   :  { %596 = vsyncpa [#allocation3 + $0x1], 1 }

</bundles_post_ra>
